<compile_context>
chip_gen: v5e
topology: v5e:2x2
jax: 0.10.0
libtpu: 0.0.40
codegen_flags: <defaults>
</compile_context>

<pallas_src>
import functools
import math

import jax
import jax.numpy as jnp
from jax.experimental import pallas as pl
from jax.experimental.pallas import tpu as pltpu

LANES = 128
DEFAULT_TILE_ROWS = 4096   # (4096, 128) f32 block = 2 MiB

_LOG2_10 = math.log2(10.0)
# eps^2 = 10 ** (-2*(10w - 1)/3) = 2 ** (_C0 + _C1 * w)
_C0 = 2.0 * _LOG2_10 / 3.0
_C1 = -20.0 * _LOG2_10 / 3.0
# (x) ** (w/2) = 2 ** ((_K * w) * ln(x)),  _K = 0.5 * log2(e)
_K = 0.5 / math.log(2.0)


def _default_num_parts():
    """2 partial sums (one per TensorCore) on v7x-class chips, else 1."""
    try:
        kind = jax.devices()[0].device_kind.lower()
    except Exception:
        return 1
    return 2 if ("v7" in kind or "tpu7" in kind or "7x" in kind) else 1


def _charbonnier_kernel(d_ref, w_ref, out_ref, acc_ref, *,
                        total, tile_rows, tiles_per_part):
    i = pl.program_id(1)

    @pl.when(i == 0)
    def _():
        acc_ref[...] = jnp.zeros_like(acc_ref)

    d = d_ref[...].astype(jnp.float32)
    w = w_ref[...].astype(jnp.float32)

    # eps^2 and the adaptive power via exp2 with folded base-2 constants.
    eps2 = jnp.exp2(_C0 + _C1 * w)
    term = jnp.exp2((_K * w) * jnp.log(d * d + eps2))

    tile_elems = tile_rows * LANES
    tile_idx = pl.program_id(0) * tiles_per_part + i
    tile_start = tile_idx * tile_elems
    full = (tile_start + tile_elems) <= total

    # Interior tiles: unmasked fast path (pure VPU add tree into (8,128) acc).
    @pl.when(full)
    def _():
        acc_ref[...] += term.reshape(-1, 8, LANES).sum(axis=0)

    # Boundary / padded tiles: select-mask the garbage tail (select, not a
    # multiplicative mask, so NaN/Inf from garbage loads cannot leak in).
    @pl.when(jnp.logical_not(full))
    def _():
        row = jax.lax.broadcasted_iota(jnp.int32, (tile_rows, LANES), 0)
        lane = jax.lax.broadcasted_iota(jnp.int32, (tile_rows, LANES), 1)
        flat_idx = tile_start + row * LANES + lane
        masked = jnp.where(flat_idx < total, term, 0.0)
        acc_ref[...] += masked.reshape(-1, 8, LANES).sum(axis=0)

    # Single XLU reduction per part, scalar written to SMEM output.
    @pl.when(i == pl.num_programs(1) - 1)
    def _():
        out_ref[0, 0] = jnp.sum(acc_ref[...])


def charbonnier_ada(diff, weight, *, tile_rows=DEFAULT_TILE_ROWS, num_parts=None):
    """Pallas TPU implementation of Charbonnier_Ada.forward(diff, weight)."""
    assert diff.shape == weight.shape, "diff and weight must share a shape"
    total = int(diff.size)
    assert total > 0

    if num_parts is None:
        num_parts = _default_num_parts()

    # Lane-dense (rows, 128) slab.  Multiple-of-128 totals reshape for free
    # (no HBM copy); only ragged totals pad the <=127-element remainder.
    rem = (-total) % LANES
    if rem:
        d_flat = jnp.pad(diff.reshape(-1), (0, rem))
        w_flat = jnp.pad(weight.reshape(-1), (0, rem))
    else:
        d_flat = diff.reshape(-1)
        w_flat = weight.reshape(-1)
    rows = (total + rem) // LANES
    d2 = d_flat.reshape(rows, LANES)
    w2 = w_flat.reshape(rows, LANES)

    # Tile rows: multiple of 8, clamped for small inputs.
    tr = min(tile_rows, ((rows + 7) // 8) * 8)
    tr = max(8, (tr // 8) * 8)
    tiles_total = -(-rows // tr)
    num_parts = max(1, min(num_parts, tiles_total))
    tiles_per_part = -(-tiles_total // num_parts)

    # Kernel index math is int32.
    assert total + num_parts * tr * LANES < 2 ** 31, "int32 index overflow"

    kernel = functools.partial(_charbonnier_kernel, total=total, tile_rows=tr,
                               tiles_per_part=tiles_per_part)
    in_map = lambda c, i: (c * tiles_per_part + i, 0)

    cost = pl.CostEstimate(
        flops=10 * total,
        transcendentals=3 * total,
        bytes_accessed=int(total * (d2.dtype.itemsize + w2.dtype.itemsize)
                           + num_parts * 4),
    )

    partials = pl.pallas_call(
        kernel,
        out_shape=jax.ShapeDtypeStruct((num_parts, 1), jnp.float32),
        grid_spec=pltpu.PrefetchScalarGridSpec(
            num_scalar_prefetch=0,
            grid=(num_parts, tiles_per_part),
            in_specs=[
                pl.BlockSpec((tr, LANES), in_map),
                pl.BlockSpec((tr, LANES), in_map),
            ],
            out_specs=pl.BlockSpec((1, 1), lambda c, i: (c, 0),
                                   memory_space=pltpu.MemorySpace.SMEM),
            scratch_shapes=[pltpu.VMEM((8, LANES), jnp.float32)],
        ),
        compiler_params=pltpu.CompilerParams(
            dimension_semantics=("parallel", "arbitrary"),
        ),
        cost_estimate=cost,
    )(d2, w2)

    return jnp.sum(partials) * jnp.float32(1.0 / total)


def _reference(diff, weight):
    d = diff.astype(jnp.float32)
    w = weight.astype(jnp.float32)
    alpha = w / 2.0
    epsilon = 10.0 ** (-(10.0 * w - 1.0) / 3.0)
    return jnp.mean((d ** 2 + epsilon ** 2) ** alpha)


if __name__ == "__main__":
    key = jax.random.PRNGKey(0)
    k1, k2, k3, k4 = jax.random.split(key, 4)

    # NCHW like the PyTorch module would see: batch=2, channels=4, 16x16.
    diff = jax.random.normal(k1, (2, 4, 16, 16), dtype=jnp.float32)
    weight = jax.random.uniform(k2, (2, 4, 16, 16), dtype=jnp.float32,
                                minval=0.1, maxval=1.0)
    ref = _reference(diff, weight)

    loss = charbonnier_ada(diff, weight)
    jax.block_until_ready(loss)
    assert jnp.allclose(loss, ref, rtol=1e-5, atol=1e-6), (loss, ref)

    # Multi-tile + two-partial-sum path (full-tile fast path, accumulator
    # init/finalize, leading "parallel" axis).
    loss_mt = charbonnier_ada(diff, weight, tile_rows=8, num_parts=2)
    jax.block_until_ready(loss_mt)
    assert jnp.allclose(loss_mt, ref, rtol=1e-5, atol=1e-6), (loss_mt, ref)

    # Ragged shape (total not a multiple of 128) exercises the pad + mask path.
    diff_r = jax.random.normal(k3, (2, 3, 17, 19), dtype=jnp.float32)
    weight_r = jax.random.uniform(k4, (2, 3, 17, 19), dtype=jnp.float32,
                                  minval=0.1, maxval=1.0)
    ref_r = _reference(diff_r, weight_r)

    loss_r = charbonnier_ada(diff_r, weight_r)
    jax.block_until_ready(loss_r)
    assert jnp.allclose(loss_r, ref_r, rtol=1e-5, atol=1e-6), (loss_r, ref_r)

    # Ragged + multi-tile: only the last tile takes the masked branch.
    loss_rm = charbonnier_ada(diff_r, weight_r, tile_rows=8, num_parts=2)
    jax.block_until_ready(loss_rm)
    assert jnp.allclose(loss_rm, ref_r, rtol=1e-5, atol=1e-6), (loss_rm, ref_r)

    print("KERNEL_OK")
</pallas_src>

<mosaic_0001>
module attributes {stable_mosaic.version = 11 : i64} {
  func.func @_charbonnier_kernel(%arg0: i32, %arg1: i32, %arg2: memref<16x128xf32, #tpu.memory_space<vmem>>, %arg3: memref<16x128xf32, #tpu.memory_space<vmem>>, %arg4: memref<1x1xf32, #tpu.memory_space<smem>>, %arg5: memref<8x128xf32, #tpu.memory_space<vmem>>) attributes {dimension_semantics = [#tpu.dimension_semantics<parallel>, #tpu.dimension_semantics<arbitrary>], iteration_bounds = array<i64: 1, 1>, scalar_prefetch = 0 : i64, scratch_operands = 1 : i64, tpu.core_type = #tpu.core_type<tc>, window_params = [{transform_indices = @transform_0, window_bounds = array<i64: 16, 128>}, {transform_indices = @transform_1, window_bounds = array<i64: 16, 128>}, {transform_indices = @transform_2, window_bounds = array<i64: 1, 1>}]} {
    %c0_i32 = arith.constant 0 : i32
    %0 = arith.cmpi eq, %arg1, %c0_i32 : i32
    %1 = arith.extui %0 : i1 to i32
    %c0_i32_0 = arith.constant 0 : i32
    %2 = arith.cmpi ne, %1, %c0_i32_0 : i32
    scf.if %2 {
      %cst_12 = arith.constant 0.000000e+00 : f32
      %30 = vector.broadcast %cst_12 : f32 to vector<8x128xf32>
      %c0_13 = arith.constant 0 : index
      %c0_14 = arith.constant 0 : index
      %31 = vector.load %arg5[%c0_13, %c0_14] : memref<8x128xf32, #tpu.memory_space<vmem>>, vector<8x128xf32>
      tpu.vector_store %arg5[%c0_13, %c0_14], %30 {strides = array<i32>} : memref<8x128xf32, #tpu.memory_space<vmem>>, vector<8x128xf32>,
    } else {
    }
    %c0 = arith.constant 0 : index
    %c0_1 = arith.constant 0 : index
    %3 = vector.load %arg2[%c0, %c0_1] : memref<16x128xf32, #tpu.memory_space<vmem>>, vector<16x128xf32>
    %c0_2 = arith.constant 0 : index
    %c0_3 = arith.constant 0 : index
    %4 = vector.load %arg3[%c0_2, %c0_3] : memref<16x128xf32, #tpu.memory_space<vmem>>, vector<16x128xf32>
    %cst = arith.constant -22.1461868 : f32
    %5 = vector.broadcast %cst : f32 to vector<16x128xf32>
    %6 = arith.mulf %5, %4 : vector<16x128xf32>
    %cst_4 = arith.constant 2.21461868 : f32
    %7 = vector.broadcast %cst_4 : f32 to vector<16x128xf32>
    %8 = arith.addf %7, %6 : vector<16x128xf32>
    %9 = math.exp2 %8 : vector<16x128xf32>
    %cst_5 = arith.constant 0.72134751 : f32
    %10 = vector.broadcast %cst_5 : f32 to vector<16x128xf32>
    %11 = arith.mulf %10, %4 : vector<16x128xf32>
    %12 = arith.mulf %3, %3 : vector<16x128xf32>
    %13 = arith.addf %12, %9 : vector<16x128xf32>
    %14 = math.log %13 : vector<16x128xf32>
    %15 = arith.mulf %11, %14 : vector<16x128xf32>
    %16 = math.exp2 %15 : vector<16x128xf32>
    %c1_i32 = arith.constant 1 : i32
    %17 = arith.muli %arg0, %c1_i32 : i32
    %18 = arith.addi %17, %arg1 : i32
    %c2048_i32 = arith.constant 2048 : i32
    %19 = arith.muli %18, %c2048_i32 : i32
    %c2048_i32_6 = arith.constant 2048 : i32
    %20 = arith.addi %19, %c2048_i32_6 : i32
    %c2048_i32_7 = arith.constant 2048 : i32
    %21 = arith.cmpi sle, %20, %c2048_i32_7 : i32
    %22 = arith.extui %21 : i1 to i32
    %c0_i32_8 = arith.constant 0 : i32
    %23 = arith.cmpi ne, %22, %c0_i32_8 : i32
    scf.if %23 {
      %c0_12 = arith.constant 0 : index
      %c0_13 = arith.constant 0 : index
      %30 = vector.load %arg5[%c0_12, %c0_13] : memref<8x128xf32, #tpu.memory_space<vmem>>, vector<8x128xf32>
      %31 = vector.shape_cast %16 : vector<16x128xf32> to vector<2x8x128xf32>
      %cst_14 = arith.constant dense<0.000000e+00> : vector<8x128xf32>
      %32 = vector.multi_reduction <add>, %31, %cst_14 [0] : vector<2x8x128xf32> to vector<8x128xf32>
      %33 = arith.addf %30, %32 : vector<8x128xf32>
      %c0_15 = arith.constant 0 : index
      %c0_16 = arith.constant 0 : index
      %34 = vector.load %arg5[%c0_15, %c0_16] : memref<8x128xf32, #tpu.memory_space<vmem>>, vector<8x128xf32>
      tpu.vector_store %arg5[%c0_15, %c0_16], %33 {strides = array<i32>} : memref<8x128xf32, #tpu.memory_space<vmem>>, vector<8x128xf32>,
    } else {
    }
    %true = arith.constant true
    %24 = arith.xori %21, %true : i1
    %25 = arith.extui %24 : i1 to i32
    %c0_i32_9 = arith.constant 0 : i32
    %26 = arith.cmpi ne, %25, %c0_i32_9 : i32
    scf.if %26 {
      %30 = tpu.iota {dimensions = array<i32: 0>} : vector<16x128xi32>
      %31 = tpu.iota {dimensions = array<i32: 1>} : vector<16x128xi32>
      %c128_i32 = arith.constant 128 : i32
      %32 = vector.broadcast %c128_i32 : i32 to vector<16x128xi32>
      %33 = arith.muli %30, %32 : vector<16x128xi32>
      %34 = vector.broadcast %19 : i32 to vector<16x128xi32>
      %35 = arith.addi %34, %33 : vector<16x128xi32>
      %36 = arith.addi %35, %31 : vector<16x128xi32>
      %c2048_i32_12 = arith.constant 2048 : i32
      %37 = vector.broadcast %c2048_i32_12 : i32 to vector<16x128xi32>
      %38 = arith.cmpi slt, %36, %37 : vector<16x128xi32>
      %cst_13 = arith.constant 0.000000e+00 : f32
      %39 = vector.broadcast %cst_13 : f32 to vector<16x128xf32>
      %40 = arith.select %38, %16, %39 : vector<16x128xi1>, vector<16x128xf32>
      %c0_14 = arith.constant 0 : index
      %c0_15 = arith.constant 0 : index
      %41 = vector.load %arg5[%c0_14, %c0_15] : memref<8x128xf32, #tpu.memory_space<vmem>>, vector<8x128xf32>
      %42 = vector.shape_cast %40 : vector<16x128xf32> to vector<2x8x128xf32>
      %cst_16 = arith.constant dense<0.000000e+00> : vector<8x128xf32>
      %43 = vector.multi_reduction <add>, %42, %cst_16 [0] : vector<2x8x128xf32> to vector<8x128xf32>
      %44 = arith.addf %41, %43 : vector<8x128xf32>
      %c0_17 = arith.constant 0 : index
      %c0_18 = arith.constant 0 : index
      %45 = vector.load %arg5[%c0_17, %c0_18] : memref<8x128xf32, #tpu.memory_space<vmem>>, vector<8x128xf32>
      tpu.vector_store %arg5[%c0_17, %c0_18], %44 {strides = array<i32>} : memref<8x128xf32, #tpu.memory_space<vmem>>, vector<8x128xf32>,
    } else {
    }
    %c0_i32_10 = arith.constant 0 : i32
    %27 = arith.cmpi eq, %arg1, %c0_i32_10 : i32
    %28 = arith.extui %27 : i1 to i32
    %c0_i32_11 = arith.constant 0 : i32
    %29 = arith.cmpi ne, %28, %c0_i32_11 : i32
    scf.if %29 {
      %c0_12 = arith.constant 0 : index
      %c0_13 = arith.constant 0 : index
      %30 = vector.load %arg5[%c0_12, %c0_13] : memref<8x128xf32, #tpu.memory_space<vmem>>, vector<8x128xf32>
      %31 = vector.shape_cast %30 : vector<8x128xf32> to vector<1x8x128xf32>
      %cst_14 = arith.constant dense<0.000000e+00> : vector<1xf32>
      %32 = vector.multi_reduction <add>, %31, %cst_14 [1, 2] : vector<1x8x128xf32> to vector<1xf32>
      %33 = vector.shape_cast %32 : vector<1xf32> to vector<1x1x1xf32>
      %34 = vector.extract %33[0, 0, 0] : f32 from vector<1x1x1xf32>
      %c0_15 = arith.constant 0 : index
      %c0_16 = arith.constant 0 : index
      %35 = memref.load %arg4[%c0_15, %c0_16] : memref<1x1xf32, #tpu.memory_space<smem>>
      memref.store %34, %arg4[%c0_15, %c0_16] : memref<1x1xf32, #tpu.memory_space<smem>>
    } else {
    }
    return
  }
  func.func @transform_0(%arg0: i32, %arg1: i32) -> (i32, i32) {
    %c1_i32 = arith.constant 1 : i32
    %0 = arith.muli %arg0, %c1_i32 : i32
    %1 = arith.addi %0, %arg1 : i32
    %c0_i32 = arith.constant 0 : i32
    %c0_i32_0 = arith.constant 0 : i32
    return %1, %c0_i32 : i32, i32
  }
  func.func @transform_1(%arg0: i32, %arg1: i32) -> (i32, i32) {
    %c1_i32 = arith.constant 1 : i32
    %0 = arith.muli %arg0, %c1_i32 : i32
    %1 = arith.addi %0, %arg1 : i32
    %c0_i32 = arith.constant 0 : i32
    %c0_i32_0 = arith.constant 0 : i32
    return %1, %c0_i32 : i32, i32
  }
  func.func @transform_2(%arg0: i32, %arg1: i32) -> (i32, i32) {
    %c0_i32 = arith.constant 0 : i32
    %c0_i32_0 = arith.constant 0 : i32
    return %arg0, %c0_i32 : i32, i32
  }
}

</mosaic_0001>

<bundles_post_ra>
// kernel: tpu_custom_call.1
= control target key start
LH: loop header
LB: loop body
LE: loop exit
PB: predicated region body
PF: predicated region fallthrough
CT: control target
= control target key end

     0   :  { %7 = vsyncpa [#allocation4], 0  ;;  %s266_s0 = inlined_call_operand.hbm [shape: f32[16,128], index: 0, kind: input, shape index: {}]   ;;  %s267_s1 = inlined_call_operand.hbm [shape: f32[16,128], index: 1, kind: input, shape index: {}]   ;;  %s268_s2 = inlined_call_operand.hbm [shape: f32[1,1], index: 2, kind: output, shape index: {}]  }
   0x1   :  { %8 = vsyncpa [#allocation7], 0 }
   0x2   :  { %9 = vsyncpa [#allocation5], 0  ;;  %s18_s11 = sshll.u32 %s266_s0, 4  ;;  %s237_s12 = smov [#allocation3]   ;;  %s19_s11 = int_to_ptr.hbm [resolvable:$true] %s18_s11 }
   0x3   :  { %s20_s13 = sshll.u32 %s237_s12, 4  ;;  %s35_s16 = sshll.u32 %s267_s1, 4  ;;  %s21_s13 = int_to_ptr.vmem [resolvable:$true] %s20_s13  ;;  %s36_s16 = int_to_ptr.hbm [resolvable:$true] %s35_s16 }
   0x4   :  { %s238_s17 = smov 128   ;;  %s239_s18 = smov 8  }
   0x5   :  { %26 = dma.hbm_to_vmem [thread:$0]  %s19_s11, 256, %s21_s13, [#allocation4], %s238_s17, %s238_s17, %s239_s18  }
   0x6   :  { %s240_s19 = smov [#allocation6]  }
   0x7   :  { %s37_s20 = sshll.u32 %s240_s19, 4  ;;  %s38_s20 = int_to_ptr.vmem [resolvable:$true] %s37_s20 }
   0x8   :  { %43 = dma.hbm_to_vmem [thread:$0]  %s36_s16, 256, %s38_s20, [#allocation7], %s238_s17, %s238_s17, %s239_s18  }
   0x9   :  { %231 = dma.done.wait [#allocation4], 256  }
   0xa   :  { %232 = vsyncadd [#allocation4], 4294967040 }
   0xb   :  { %233 = dma.done.wait [#allocation7], 256  }
   0xc   :  { %234 = vsyncadd [#allocation7], 4294967040  ;;  %v63_v0 = vld [vmem:[#allocation6] sm:$0xff]  ;;  %v64_v1 = vld [vmem:[#allocation6 + $0x8] sm:$0xff]  ;;  %s140_s21 = sshll.u32 %s268_s2, 4  ;;  %s241_s23 = smov [#allocation8]   ;;  %s141_s21 = int_to_ptr.hbm [resolvable:$true] %s140_s21 }
   0xd   :  { %v65_v2 = vmul.f32 -22.146187, %v63_v0  ;;  %v66_v3 = vmul.f32 -22.146187, %v64_v1  ;;  %v61_v6 = vld [vmem:[#allocation3] sm:$0xff]  ;;  %v62_v7 = vld [vmem:[#allocation3 + $0x8] sm:$0xff] }
   0xe   :  { %v73_v8 = vmul.f32 %v61_v6, %v61_v6  ;;  %v74_v9 = vmul.f32 %v62_v7, %v62_v7  ;;  %v71_v14 = vmul.f32 0.7213475, %v63_v0  ;;  %v72_v16 = vmul.f32 0.7213475, %v64_v1 }
   0xf   :  { %v67_v4 = vadd.f32 2.2146187, %v65_v2  ;;  %v68_v5 = vadd.f32 2.2146187, %v66_v3 }
  0x11   :  { %159 = vpow2.f32 %v67_v4 }
  0x12   :  { %161 = vpow2.f32 %v68_v5 }
  0x17   :  { %v160_v10 = vpop.eup %159 }
  0x18   :  { %v162_v11 = vpop.eup %161  ;;  %v75_v12 = vadd.f32 %v160_v10, %v73_v8 }
  0x19   :  { %v76_v13 = vadd.f32 %v162_v11, %v74_v9 }
  0x1a   :  { %163 = vlog2.f32 %v75_v12 }
  0x1b   :  { %165 = vlog2.f32 %v76_v13 }
  0x20   :  { %v164_v15 = vpop.eup %163 }
  0x21   :  { %v166_v17 = vpop.eup %165  ;;  %v78_v18 = vmul.f32 0.6931472, %v164_v15 }
  0x22   :  { %v80_v19 = vmul.f32 0.6931472, %v166_v17 }
  0x23   :  { %v81_v20 = vmul.f32 %v78_v18, %v71_v14 }
  0x24   :  { %v82_v21 = vmul.f32 %v80_v19, %v72_v16 }
  0x25   :  { %167 = vpow2.f32 %v81_v20 }
  0x26   :  { %169 = vpow2.f32 %v82_v21 }
  0x2b   :  { %v168_v22 = vpop.eup %167 }
  0x2c   :  { %v170_v23 = vpop.eup %169 }
  0x2d   :  { %v93_v24 = vadd.f32 %v170_v23, %v168_v22 }
  0x2f   :  { %124 = vadd.xlane.f32.xlu0 %v93_v24 }
  0xa2   :  { %v125_v25 = vpop.xlane.xlu0 %124 }
  0xa3   :  { %v126_v26 = vrot.slane %v125_v25, 4 }
  0xa5   :  { %v127_v27 = vadd.f32 %v126_v26, %v125_v25 }
  0xa7   :  { %v128_v28 = vrot.slane %v127_v27, 2 }
  0xa9   :  { %v129_v29 = vadd.f32 %v128_v28, %v127_v27 }
  0xab   :  { %v130_v30 = vrot.slane %v129_v29, 1 }
  0xad   :  { %v131_v31 = vadd.f32 %v130_v30, %v129_v29 }
  0xaf   :  { %152 = vpush %v131_v31 }
  0xe0   :  { %s153_s22 = spop %152 }
  0xe1   :  { %134 = sst [smem:[#allocation8]] %s153_s22 }
  0xe2   :  { %143 = dma.smem_to_hbm %s241_s23, 16, %s141_s21, [#allocation5]  }
  0xe3   :  { %235 = dma.done.wait [#allocation5], 16  }
  0xe4   :  { %236 = vsyncadd [#allocation5], 4294967280 }
  0xe5   :  { %148 = sfence }
  0xe6   :  { %149 = vsyncpa [#allocation4], 1 }
  0xe7   :  { %150 = vsyncpa [#allocation7], 1 }
  0xe8   :  { %151 = vsyncpa [#allocation5], 1 }

</bundles_post_ra>
